<compile_context>
chip_gen: v6e
topology: v6e:2x2x1
jax: 0.10.0
libtpu: 0.0.40
codegen_flags: <defaults>
</compile_context>

<pallas_src>
import jax
import jax.numpy as jnp
from jax.experimental import pallas as pl
from jax.experimental.pallas import tpu as pltpu  # noqa: F401  (TPU backend)

_LANE = 128  # TPU vreg lane width


def _round_up(n, m):
    return ((n + m - 1) // m) * m


# ---------------------------------------------------------------------------
# Kernel
# ---------------------------------------------------------------------------
def _lstm_cell_kernel(x_ref, h_ref, c_ref,
                      wx_ref, wh_ref, bg_ref,
                      wy_ref, by_ref,
                      y_ref, h_out_ref, c_out_ref):
    """One fused LSTM step + output projection, entirely in VMEM (single block).

    Gate layout along the 4*Hp lane axis: [forget | input | cell_cand | out].
    """
    x = x_ref[...]          # (B, IN)
    h = h_ref[...]          # (B, Hp)   (padded lanes are zero)
    c = c_ref[...]          # (B, Hp)

    hp = h.shape[-1]

    # Single fused gate projection on the MXU: (B, 4*Hp).
    gates = (jnp.dot(x, wx_ref[...], preferred_element_type=jnp.float32)
             + jnp.dot(h, wh_ref[...], preferred_element_type=jnp.float32)
             + bg_ref[...])

    forget = jax.nn.sigmoid(gates[:, 0 * hp:1 * hp])
    inp = jax.nn.sigmoid(gates[:, 1 * hp:2 * hp])
    cell_cand = jnp.tanh(gates[:, 2 * hp:3 * hp])
    out_gate = jax.nn.sigmoid(gates[:, 3 * hp:4 * hp])

    c_new = forget * c + inp * cell_cand        # (B, Hp); padded lanes stay 0
    h_new = out_gate * jnp.tanh(c_new)          # (B, Hp); padded lanes stay 0

    y = jnp.dot(h_new, wy_ref[...],
                preferred_element_type=jnp.float32) + by_ref[...]  # (B, OUTp)

    y_ref[...] = y
    h_out_ref[...] = h_new
    c_out_ref[...] = c_new


# ---------------------------------------------------------------------------
# Wrapper
# ---------------------------------------------------------------------------
def custom_lstm_forward(x, params, hidden_state=None, cell_state=None):
    """Mirrors CustomLSTM.forward: returns (output, hidden_state, cell_state)."""
    x = x.astype(jnp.float32)
    batch = x.shape[0]
    hidden_size = params["hidden_size"]
    output_size = params["output_size"]
    hp = params["hp"]
    op = params["op"]

    if hidden_state is None or cell_state is None:
        h_pad = jnp.zeros((batch, hp), jnp.float32)
        c_pad = jnp.zeros((batch, hp), jnp.float32)
    else:
        h_pad = jnp.pad(hidden_state.astype(jnp.float32),
                        ((0, 0), (0, hp - hidden_size)))
        c_pad = jnp.pad(cell_state.astype(jnp.float32),
                        ((0, 0), (0, hp - hidden_size)))

    args = (x, h_pad, c_pad,
            params["wx"], params["wh"], params["bg"],
            params["wy"], params["by"])

    full = lambda a: pl.BlockSpec(a.shape, lambda: (0,) * a.ndim)

    y_pad, h_new, c_new = pl.pallas_call(
        _lstm_cell_kernel,
        out_shape=(
            jax.ShapeDtypeStruct((batch, op), jnp.float32),
            jax.ShapeDtypeStruct((batch, hp), jnp.float32),
            jax.ShapeDtypeStruct((batch, hp), jnp.float32),
        ),
        in_specs=[full(a) for a in args],
        out_specs=(
            pl.BlockSpec((batch, op), lambda: (0, 0)),
            pl.BlockSpec((batch, hp), lambda: (0, 0)),
            pl.BlockSpec((batch, hp), lambda: (0, 0)),
        ),
        # Reuse the recurrent-state HBM buffers across repeated calls.
        input_output_aliases={1: 1, 2: 2},
    )(*args)

    # Strip lane padding (padded lanes are exact zeros by construction).
    return (y_pad[:, :output_size],
            h_new[:, :hidden_size],
            c_new[:, :hidden_size])


# ---------------------------------------------------------------------------
# Parameters
# ---------------------------------------------------------------------------
def init_params(key, input_size, hidden_size, output_size):
    """Deterministic init matching nn.Linear shapes (weights stored (in, out))."""
    def linear_init(k, fan_in, fan_out):
        kw, kb = jax.random.split(k)
        bound = 1.0 / jnp.sqrt(jnp.float32(fan_in))
        w = jax.random.uniform(kw, (fan_in, fan_out), jnp.float32, -bound, bound)
        b = jax.random.uniform(kb, (1, fan_out), jnp.float32, -bound, bound)
        return w, b

    ks = jax.random.split(key, 5)
    cat = input_size + hidden_size
    wc, bc = linear_init(ks[0], cat, hidden_size)   # in2cell
    wi, bi = linear_init(ks[1], cat, hidden_size)   # in2in
    wf, bf = linear_init(ks[2], cat, hidden_size)   # in2frg
    wo, bo = linear_init(ks[3], cat, hidden_size)   # in2out
    wy, by = linear_init(ks[4], hidden_size, output_size)  # out_layer
    return dict(wc=wc, bc=bc, wi=wi, bi=bi, wf=wf, bf=bf,
                wo=wo, bo=bo, wy=wy, by=by)


def pack_params(raw, input_size, hidden_size, output_size):
    """Fuse the four gate linears into one lane-dense weight set.

    Gate order along the 4*Hp axis: [forget, input, cell_cand, out].
    Feature dims are zero-padded up to multiples of 128 so all kernel
    loads/stores are lane-dense; padding is mathematically inert.
    """
    hp = _round_up(hidden_size, _LANE)
    op = _round_up(output_size, _LANE)

    def pad_to(a, shape):
        return jnp.pad(a, [(0, t - s) for s, t in zip(a.shape, shape)])

    gate_w = ("wf", "wi", "wc", "wo")
    gate_b = ("bf", "bi", "bc", "bo")

    wx_parts, wh_parts, b_parts = [], [], []
    for wk, bk in zip(gate_w, gate_b):
        w = raw[wk]                                       # (IN + H, H)
        wx_parts.append(pad_to(w[:input_size, :], (input_size, hp)))
        wh_parts.append(pad_to(w[input_size:, :], (hp, hp)))
        b_parts.append(pad_to(raw[bk], (1, hp)))

    return dict(
        wx=jnp.concatenate(wx_parts, axis=1),    # (IN, 4*Hp)
        wh=jnp.concatenate(wh_parts, axis=1),    # (Hp, 4*Hp)
        bg=jnp.concatenate(b_parts, axis=1),     # (1, 4*Hp)
        wy=pad_to(raw["wy"], (hp, op)),          # (Hp, OUTp)
        by=pad_to(raw["by"], (1, op)),           # (1, OUTp)
        input_size=input_size,
        hidden_size=hidden_size,
        output_size=output_size,
        hp=hp,
        op=op,
    )


# ---------------------------------------------------------------------------
# Pure-JAX reference (matches the PyTorch module)
# ---------------------------------------------------------------------------
def _reference_forward(x, raw, hidden_state, cell_state):
    cmb = jnp.concatenate([x, hidden_state], axis=1)
    forget = jax.nn.sigmoid(cmb @ raw["wf"] + raw["bf"])
    inp = jax.nn.sigmoid(cmb @ raw["wi"] + raw["bi"])
    cell_cand = jnp.tanh(cmb @ raw["wc"] + raw["bc"])
    c_new = forget * cell_state + inp * cell_cand
    out_gate = jax.nn.sigmoid(cmb @ raw["wo"] + raw["bo"])
    h_new = out_gate * jnp.tanh(c_new)
    y = h_new @ raw["wy"] + raw["by"]
    return y, h_new, c_new


if __name__ == "__main__":
    input_size, hidden_size, output_size = 16, 32, 8
    batch = 8

    key = jax.random.PRNGKey(0)
    k_param, k_x = jax.random.split(key)
    raw = init_params(k_param, input_size, hidden_size, output_size)
    params = pack_params(raw, input_size, hidden_size, output_size)
    x = jax.random.normal(k_x, (batch, input_size), jnp.float32)

    out, h, c = custom_lstm_forward(x, params)
    jax.block_until_ready((out, h, c))

    # Sanity check against a pure-JAX reference of the original module.
    h0 = jnp.zeros((batch, hidden_size), jnp.float32)
    c0 = jnp.zeros((batch, hidden_size), jnp.float32)
    ref_out, ref_h, ref_c = _reference_forward(x, raw, h0, c0)
    assert out.shape == (batch, output_size)
    assert h.shape == (batch, hidden_size) and c.shape == (batch, hidden_size)
    assert jnp.allclose(out, ref_out, atol=1e-4, rtol=1e-4)
    assert jnp.allclose(h, ref_h, atol=1e-4, rtol=1e-4)
    assert jnp.allclose(c, ref_c, atol=1e-4, rtol=1e-4)

    # Second step reusing the returned state (exercises the aliased h/c path).
    out2, h2, c2 = custom_lstm_forward(x, params, h, c)
    ref_out2, ref_h2, ref_c2 = _reference_forward(x, raw, ref_h, ref_c)
    jax.block_until_ready((out2, h2, c2))
    assert jnp.allclose(out2, ref_out2, atol=1e-4, rtol=1e-4)
    assert jnp.allclose(h2, ref_h2, atol=1e-4, rtol=1e-4)
    assert jnp.allclose(c2, ref_c2, atol=1e-4, rtol=1e-4)

    print("KERNEL_OK")
</pallas_src>

<mosaic_0001>
module attributes {stable_mosaic.version = 11 : i64} {
  func.func @_lstm_cell_kernel(%arg0: memref<8x16xf32, #tpu.memory_space<vmem>>, %arg1: memref<8x128xf32, #tpu.memory_space<vmem>>, %arg2: memref<8x128xf32, #tpu.memory_space<vmem>>, %arg3: memref<16x512xf32, #tpu.memory_space<vmem>>, %arg4: memref<128x512xf32, #tpu.memory_space<vmem>>, %arg5: memref<1x512xf32, #tpu.memory_space<vmem>>, %arg6: memref<128x128xf32, #tpu.memory_space<vmem>>, %arg7: memref<1x128xf32, #tpu.memory_space<vmem>>, %arg8: memref<8x128xf32, #tpu.memory_space<vmem>>, %arg9: memref<8x128xf32, #tpu.memory_space<vmem>>, %arg10: memref<8x128xf32, #tpu.memory_space<vmem>>) attributes {dimension_semantics = [], scalar_prefetch = 0 : i64, scratch_operands = 0 : i64, tpu.core_type = #tpu.core_type<tc>} {
    %c0 = arith.constant 0 : index
    %c0_0 = arith.constant 0 : index
    %0 = vector.load %arg0[%c0, %c0_0] : memref<8x16xf32, #tpu.memory_space<vmem>>, vector<8x16xf32>
    %c0_1 = arith.constant 0 : index
    %c0_2 = arith.constant 0 : index
    %1 = vector.load %arg1[%c0_1, %c0_2] : memref<8x128xf32, #tpu.memory_space<vmem>>, vector<8x128xf32>
    %c0_3 = arith.constant 0 : index
    %c0_4 = arith.constant 0 : index
    %2 = vector.load %arg2[%c0_3, %c0_4] : memref<8x128xf32, #tpu.memory_space<vmem>>, vector<8x128xf32>
    %c0_5 = arith.constant 0 : index
    %c0_6 = arith.constant 0 : index
    %3 = vector.load %arg3[%c0_5, %c0_6] : memref<16x512xf32, #tpu.memory_space<vmem>>, vector<16x512xf32>
    %cst = arith.constant dense<0.000000e+00> : vector<8x512xf32>
    %4 = tpu.matmul %0, %3, %cst {dimension_numbers = #tpu.dot_dimension_numbers<[1], [0], [0], [1], [0, 0, 1, 1], [], []>} : vector<8x16xf32>, vector<16x512xf32>, vector<8x512xf32> -> vector<8x512xf32>
    %c0_7 = arith.constant 0 : index
    %c0_8 = arith.constant 0 : index
    %5 = vector.load %arg4[%c0_7, %c0_8] : memref<128x512xf32, #tpu.memory_space<vmem>>, vector<128x512xf32>
    %cst_9 = arith.constant dense<0.000000e+00> : vector<8x512xf32>
    %6 = tpu.matmul %1, %5, %cst_9 {dimension_numbers = #tpu.dot_dimension_numbers<[1], [0], [0], [1], [0, 0, 1, 1], [], []>} : vector<8x128xf32>, vector<128x512xf32>, vector<8x512xf32> -> vector<8x512xf32>
    %7 = arith.addf %4, %6 : vector<8x512xf32>
    %c0_10 = arith.constant 0 : index
    %c0_11 = arith.constant 0 : index
    %8 = vector.load %arg5[%c0_10, %c0_11] : memref<1x512xf32, #tpu.memory_space<vmem>>, vector<1x512xf32>
    %9 = vector.broadcast %8 : vector<1x512xf32> to vector<8x512xf32>
    %10 = arith.addf %7, %9 : vector<8x512xf32>
    %11 = vector.extract_strided_slice %10 {offsets = [0, 0], sizes = [8, 128], strides = [1, 1]} : vector<8x512xf32> to vector<8x128xf32>
    %12 = arith.negf %11 : vector<8x128xf32>
    %13 = math.exp %12 : vector<8x128xf32>
    %cst_12 = arith.constant 1.000000e+00 : f32
    %14 = vector.broadcast %cst_12 : f32 to vector<8x128xf32>
    %15 = arith.addf %14, %13 : vector<8x128xf32>
    %16 = arith.divf %14, %15 : vector<8x128xf32>
    %17 = vector.extract_strided_slice %10 {offsets = [0, 128], sizes = [8, 128], strides = [1, 1]} : vector<8x512xf32> to vector<8x128xf32>
    %18 = arith.negf %17 : vector<8x128xf32>
    %19 = math.exp %18 : vector<8x128xf32>
    %cst_13 = arith.constant 1.000000e+00 : f32
    %20 = vector.broadcast %cst_13 : f32 to vector<8x128xf32>
    %21 = arith.addf %20, %19 : vector<8x128xf32>
    %22 = arith.divf %20, %21 : vector<8x128xf32>
    %23 = vector.extract_strided_slice %10 {offsets = [0, 256], sizes = [8, 128], strides = [1, 1]} : vector<8x512xf32> to vector<8x128xf32>
    %24 = math.tanh %23 : vector<8x128xf32>
    %25 = vector.extract_strided_slice %10 {offsets = [0, 384], sizes = [8, 128], strides = [1, 1]} : vector<8x512xf32> to vector<8x128xf32>
    %26 = arith.negf %25 : vector<8x128xf32>
    %27 = math.exp %26 : vector<8x128xf32>
    %cst_14 = arith.constant 1.000000e+00 : f32
    %28 = vector.broadcast %cst_14 : f32 to vector<8x128xf32>
    %29 = arith.addf %28, %27 : vector<8x128xf32>
    %30 = arith.divf %28, %29 : vector<8x128xf32>
    %31 = arith.mulf %16, %2 : vector<8x128xf32>
    %32 = arith.mulf %22, %24 : vector<8x128xf32>
    %33 = arith.addf %31, %32 : vector<8x128xf32>
    %34 = math.tanh %33 : vector<8x128xf32>
    %35 = arith.mulf %30, %34 : vector<8x128xf32>
    %c0_15 = arith.constant 0 : index
    %c0_16 = arith.constant 0 : index
    %36 = vector.load %arg6[%c0_15, %c0_16] : memref<128x128xf32, #tpu.memory_space<vmem>>, vector<128x128xf32>
    %cst_17 = arith.constant dense<0.000000e+00> : vector<8x128xf32>
    %37 = tpu.matmul %35, %36, %cst_17 {dimension_numbers = #tpu.dot_dimension_numbers<[1], [0], [0], [1], [0, 0, 1, 1], [], []>} : vector<8x128xf32>, vector<128x128xf32>, vector<8x128xf32> -> vector<8x128xf32>
    %c0_18 = arith.constant 0 : index
    %c0_19 = arith.constant 0 : index
    %38 = vector.load %arg7[%c0_18, %c0_19] : memref<1x128xf32, #tpu.memory_space<vmem>>, vector<1x128xf32>
    %39 = vector.broadcast %38 : vector<1x128xf32> to vector<8x128xf32>
    %40 = arith.addf %37, %39 : vector<8x128xf32>
    %c0_20 = arith.constant 0 : index
    %c0_21 = arith.constant 0 : index
    %41 = vector.load %arg8[%c0_20, %c0_21] : memref<8x128xf32, #tpu.memory_space<vmem>>, vector<8x128xf32>
    tpu.vector_store %arg8[%c0_20, %c0_21], %40 {strides = array<i32>} : memref<8x128xf32, #tpu.memory_space<vmem>>, vector<8x128xf32>,
    %c0_22 = arith.constant 0 : index
    %c0_23 = arith.constant 0 : index
    %42 = vector.load %arg9[%c0_22, %c0_23] : memref<8x128xf32, #tpu.memory_space<vmem>>, vector<8x128xf32>
    tpu.vector_store %arg9[%c0_22, %c0_23], %35 {strides = array<i32>} : memref<8x128xf32, #tpu.memory_space<vmem>>, vector<8x128xf32>,
    %c0_24 = arith.constant 0 : index
    %c0_25 = arith.constant 0 : index
    %43 = vector.load %arg10[%c0_24, %c0_25] : memref<8x128xf32, #tpu.memory_space<vmem>>, vector<8x128xf32>
    tpu.vector_store %arg10[%c0_24, %c0_25], %33 {strides = array<i32>} : memref<8x128xf32, #tpu.memory_space<vmem>>, vector<8x128xf32>,
    return
  }
}

</mosaic_0001>

<bundles_post_ra>
// kernel: tpu_custom_call.1
= control target key start
LH: loop header
LB: loop body
LE: loop exit
PB: predicated region body
PF: predicated region fallthrough
CT: control target
= control target key end

     0   :  { %16 = vsyncpa [#allocation3], 0  ;;  %s1034_s0 = inlined_call_operand.vmem [shape: f32[8,16], index: 0, kind: input, shape index: {}]   ;;  %s1035_s1 = inlined_call_operand.hbm [shape: f32[8,128], index: 1, kind: input, shape index: {}, may-alias: {1,9}]   ;;  %s1036_s2 = inlined_call_operand.hbm [shape: f32[8,128], index: 2, kind: input, shape index: {}, may-alias: {2,10}]   ;;  %s1037_s3 = inlined_call_operand.hbm [shape: f32[16,512], index: 3, kind: input, shape index: {}]   ;;  %s1038_s4 = inlined_call_operand.hbm [shape: f32[128,512], index: 4, kind: input, shape index: {}]   ;;  %s1039_s5 = inlined_call_operand.vmem [shape: f32[1,512], index: 5, kind: input, shape index: {}]   ;;  %s1040_s6 = inlined_call_operand.hbm [shape: f32[128,128], index: 6, kind: input, shape index: {}]   ;;  %s1041_s7 = inlined_call_operand.vmem [shape: f32[1,128], index: 7, kind: input, shape index: {}]   ;;  %s1042_s8 = inlined_call_operand.hbm [shape: f32[8,128], index: 8, kind: output, shape index: {0}]   ;;  %s1043_s9 = inlined_call_operand.hbm [shape: f32[8,128], index: 9, kind: output, shape index: {1}, may-alias: {1,9}]   ;;  %s1044_s10 = inlined_call_operand.hbm [shape: f32[8,128], index: 10, kind: output, shape index: {2}, may-alias: {2,10}]  }
   0x1   :  { %17 = vsyncpa [#allocation6], 0 }
   0x2   :  { %18 = vsyncpa [#allocation9], 0 }
   0x3   :  { %19 = vsyncpa [#allocation4], 0 }
   0x4   :  { %20 = vsyncpa [#allocation13], 0  ;;  %s909_s13 = smov [#allocation5]  }
   0x5   :  { %s39_s14 = sshll.u32 %s909_s13, 4  ;;  %s40_s14 = int_to_ptr.vmem [resolvable:$true] %s39_s14 }
   0x6   :  { %s747_s15 = scalar_lea.vmem %s40_s14, 128  ;;  %p752_p1 = scmp.lt.s32.totalorder %s40_s14, %s40_s14 }
   0x7   :  { %p748_p0 = scmp.ne.s32.totalorder %s40_s14, %s747_s15  ;;  %p753_p2 = scmp.lt.s32.totalorder %s747_s15, %s747_s15 }
   0x9   :  { %p754_p3 = por %p753_p2, %p752_p1 }
   0xb   :  { %p755_p4 = pnand %p754_p3, %p748_p0 }
   0xd   :  { %758 = shalt.err (!%p755_p4)
}
   0xe   :  { %42 = dma.hbm_to_vmem [thread:$0]  %s1036_s2, 128, %s40_s14, [#allocation6]  }
   0xf   :  { %s910_s18 = smov [#allocation8]   ;;  %s911_s20 = smov [#allocation2]  }
  0x10   :  { %s60_s19 = sshll.u32 %s910_s18, 4  ;;  %s29_s21 = sshll.u32 %s911_s20, 4  ;;  %s61_s19 = int_to_ptr.vmem [resolvable:$true] %s60_s19  ;;  %s30_s21 = int_to_ptr.vmem [resolvable:$true] %s29_s21 }
  0x11   :  { %s767_s22 = scalar_lea.vmem %s61_s19, 8192  ;;  %p772_p6 = scmp.lt.s32.totalorder %s61_s19, %s61_s19 }
  0x12   :  { %p768_p5 = scmp.ne.s32.totalorder %s61_s19, %s767_s22  ;;  %p773_p7 = scmp.lt.s32.totalorder %s767_s22, %s767_s22 }
  0x14   :  { %p774_p8 = por %p773_p7, %p772_p6 }
  0x16   :  { %p775_p9 = pnand %p774_p8, %p768_p5 }
  0x18   :  { %778 = shalt.err (!%p775_p9)
}
  0x19   :  { %s912_s23 = smov 512   ;;  %s913_s24 = smov 32  }
  0x1a   :  { %66 = dma.hbm_to_vmem [thread:$0]  %s1038_s4, 8192, %s61_s19, [#allocation9], %s912_s23, %s912_s23, %s913_s24  }
  0x1b   :  { %s787_s2 = scalar_lea.vmem %s30_s21, 128  ;;  %p792_p11 = scmp.lt.s32.totalorder %s30_s21, %s30_s21 }
  0x1c   :  { %p788_p10 = scmp.ne.s32.totalorder %s30_s21, %s787_s2  ;;  %p793_p12 = scmp.lt.s32.totalorder %s787_s2, %s787_s2 }
  0x1e   :  { %p794_p13 = por %p793_p12, %p792_p11 }
  0x20   :  { %p795_p0 = pnand %p794_p13, %p788_p10 }
  0x22   :  { %798 = shalt.err (!%p795_p0)
}
  0x23   :  { %32 = dma.hbm_to_vmem [thread:$0]  %s1035_s1, 128, %s30_s21, [#allocation3]  }
  0x24   :  { %s914_s29 = smov [#allocation7]   ;;  %s915_s11 = smov [#allocation10]  }
  0x25   :  { %s48_s30 = sshll.u32 %s914_s29, 4  ;;  %s74_s12 = sshll.u32 %s915_s11, 4  ;;  %s49_s30 = int_to_ptr.vmem [resolvable:$true] %s48_s30  ;;  %s75_s12 = int_to_ptr.vmem [resolvable:$true] %s74_s12 }
  0x26   :  { %s807_s13 = scalar_lea.vmem %s49_s30, 1024  ;;  %p812_p2 = scmp.lt.s32.totalorder %s49_s30, %s49_s30 }
  0x27   :  { %p808_p1 = scmp.ne.s32.totalorder %s49_s30, %s807_s13  ;;  %p813_p3 = scmp.lt.s32.totalorder %s807_s13, %s807_s13 }
  0x29   :  { %p814_p4 = por %p813_p3, %p812_p2 }
  0x2b   :  { %p815_p5 = pnand %p814_p4, %p808_p1 }
  0x2d   :  { %818 = shalt.err (!%p815_p5)
}
  0x2e   :  { %54 = dma.hbm_to_vmem [thread:$0]  %s1037_s3, 1024, %s49_s30, [#allocation6], %s912_s23, %s912_s23, %s913_s24  }
  0x2f   :  { %s827_s15 = scalar_lea.vmem %s75_s12, 2048  ;;  %p832_p7 = scmp.lt.s32.totalorder %s75_s12, %s75_s12 }
  0x30   :  { %p828_p6 = scmp.ne.s32.totalorder %s75_s12, %s827_s15  ;;  %p833_p8 = scmp.lt.s32.totalorder %s827_s15, %s827_s15 }
  0x32   :  { %p834_p9 = por %p833_p8, %p832_p7 }
  0x34   :  { %p835_p10 = pnand %p834_p9, %p828_p6 }
  0x36   :  { %838 = shalt.err (!%p835_p10)
}
  0x37   :  { %s916_s1 = smov 128   ;;  %s917_s16 = smov 8  }
  0x38   :  { %80 = dma.hbm_to_vmem [thread:$0]  %s1040_s6, 2048, %s75_s12, [#allocation9], %s916_s1, %s916_s1, %s917_s16  }
  0x39   :  { %899 = dma.done.wait [#allocation3], 128  }
  0x3a   :  { %900 = vsyncadd [#allocation3], 4294967168 }
  0x3b   :  { %901 = dma.done.wait [#allocation6], 1152  }
  0x3c   :  { %902 = vsyncadd [#allocation6], 4294966144 }
  0x3d   :  { %903 = dma.done.wait [#allocation9], 10240  }
  0x3e   :  { %904 = vsyncadd [#allocation9], 4294957056  ;;  %v918_v0 = vmov 0.0   ;;  %v172_v1 = vld [vmem:[#allocation8 + $0x1f8] sm:$0xff]  ;;  %v171_v2 = vld [vmem:[#allocation8 + $0x1f0] sm:$0xff]  ;;  %vm315_vm0 = vcmask 130048  }
  0x3f   :  { %308 = vmatprep.mubr.f32.mxu1 %v918_v0  ;;  %237 = vmatprep.mubr.f32.mxu0 %v918_v0  ;;  %v168_v3 = vld [vmem:[#allocation8 + $0x1d8] sm:$0xff]  ;;  %v170_v4 = vld [vmem:[#allocation8 + $0x1e8] sm:$0xff]  ;;  %v167_v5 = vld [vmem:[#allocation8 + $0x1d0] sm:$0xff]  ;;  %vm919_vm1 = vmmov 0  }
  0x40   :  { %244 = vmatprep.subr.mxu1 %v172_v1  ;;  %v169_v6 = vld [vmem:[#allocation8 + $0x1e0] sm:$0xff]  ;;  %173 = vmatprep.subr.mxu0 %v170_v4  ;;  %v164_v7 = vld [vmem:[#allocation8 + $0x1b8] sm:$0xff]  ;;  %v166_v8 = vld [vmem:[#allocation8 + $0x1c8] sm:$0xff] }
  0x41   :  { %245 = vmatpush1.msra.mxu1 %v171_v2  ;;  %174 = vmatpush1.msra.mxu0 %v169_v6  ;;  %v163_v9 = vld [vmem:[#allocation8 + $0x1b0] sm:$0xff]  ;;  %v165_v10 = vld [vmem:[#allocation8 + $0x1c0] sm:$0xff]  ;;  %v162_v11 = vld [vmem:[#allocation8 + $0x1a8] sm:$0xff] }
  0x42   :  { %246 = vmatprep.subr.mxu1 %v168_v3  ;;  %175 = vmatprep.subr.mxu0 %v166_v8  ;;  %v160_v12 = vld [vmem:[#allocation8 + $0x198] sm:$0xff]  ;;  %v161_v13 = vld [vmem:[#allocation8 + $0x1a0] sm:$0xff]  ;;  %v159_v14 = vld [vmem:[#allocation8 + $0x190] sm:$0xff] }
  0x43   :  { %247 = vmatpush1.msra.mxu1 %v167_v5  ;;  %176 = vmatpush1.msra.mxu0 %v165_v10  ;;  %v158_v15 = vld [vmem:[#allocation8 + $0x188] sm:$0xff]  ;;  %v156_v16 = vld [vmem:[#allocation8 + $0x178] sm:$0xff]  ;;  %v157_v17 = vld [vmem:[#allocation8 + $0x180] sm:$0xff] }
  0x44   :  { %248 = vmatprep.subr.mxu1 %v164_v7  ;;  %177 = vmatprep.subr.mxu0 %v162_v11  ;;  %v155_v18 = vld [vmem:[#allocation8 + $0x170] sm:$0xff]  ;;  %v154_v19 = vld [vmem:[#allocation8 + $0x168] sm:$0xff]  ;;  %v152_v20 = vld [vmem:[#allocation8 + $0x158] sm:$0xff] }
  0x45   :  { %249 = vmatpush1.msra.mxu1 %v163_v9  ;;  %178 = vmatpush1.msra.mxu0 %v161_v13  ;;  %v153_v21 = vld [vmem:[#allocation8 + $0x160] sm:$0xff]  ;;  %v151_v22 = vld [vmem:[#allocation8 + $0x150] sm:$0xff]  ;;  %v150_v23 = vld [vmem:[#allocation8 + $0x148] sm:$0xff] }
  0x46   :  { %250 = vmatprep.subr.mxu1 %v160_v12  ;;  %179 = vmatprep.subr.mxu0 %v158_v15  ;;  %v148_v24 = vld [vmem:[#allocation8 + $0x138] sm:$0xff]  ;;  %v149_v25 = vld [vmem:[#allocation8 + $0x140] sm:$0xff]  ;;  %v147_v26 = vld [vmem:[#allocation8 + $0x130] sm:$0xff] }
  0x47   :  { %251 = vmatpush1.msra.mxu1 %v159_v14  ;;  %180 = vmatpush1.msra.mxu0 %v157_v17  ;;  %v146_v27 = vld [vmem:[#allocation8 + $0x128] sm:$0xff]  ;;  %v144_v28 = vld [vmem:[#allocation8 + $0x118] sm:$0xff]  ;;  %v145_v29 = vld [vmem:[#allocation8 + $0x120] sm:$0xff] }
  0x48   :  { %252 = vmatprep.subr.mxu1 %v156_v16  ;;  %181 = vmatprep.subr.mxu0 %v154_v19  ;;  %v143_v30 = vld [vmem:[#allocation8 + $0x110] sm:$0xff]  ;;  %v142_v31 = vld [vmem:[#allocation8 + $0x108] sm:$0xff]  ;;  %v140_v32 = vld [vmem:[#allocation8 + $0xf8] sm:$0xff] }
  0x49   :  { %253 = vmatpush1.msra.mxu1 %v155_v18  ;;  %182 = vmatpush1.msra.mxu0 %v153_v21  ;;  %v141_v33 = vld [vmem:[#allocation8 + $0x100] sm:$0xff]  ;;  %v139_v34 = vld [vmem:[#allocation8 + $0xf0] sm:$0xff]  ;;  %v138_v35 = vld [vmem:[#allocation8 + $0xe8] sm:$0xff] }
  0x4a   :  { %254 = vmatprep.subr.mxu1 %v152_v20  ;;  %183 = vmatprep.subr.mxu0 %v150_v23  ;;  %v136_v36 = vld [vmem:[#allocation8 + $0xd8] sm:$0xff]  ;;  %v137_v37 = vld [vmem:[#allocation8 + $0xe0] sm:$0xff]  ;;  %v135_v38 = vld [vmem:[#allocation8 + $0xd0] sm:$0xff] }
  0x4b   :  { %255 = vmatpush1.msra.mxu1 %v151_v22  ;;  %184 = vmatpush1.msra.mxu0 %v149_v25  ;;  %v134_v39 = vld [vmem:[#allocation8 + $0xc8] sm:$0xff]  ;;  %v132_v40 = vld [vmem:[#allocation8 + $0xb8] sm:$0xff]  ;;  %v133_v41 = vld [vmem:[#allocation8 + $0xc0] sm:$0xff] }
  0x4c   :  { %256 = vmatprep.subr.mxu1 %v148_v24  ;;  %185 = vmatprep.subr.mxu0 %v146_v27  ;;  %v131_v42 = vld [vmem:[#allocation8 + $0xb0] sm:$0xff]  ;;  %v130_v43 = vld [vmem:[#allocation8 + $0xa8] sm:$0xff]  ;;  %v128_v44 = vld [vmem:[#allocation8 + $0x98] sm:$0xff] }
  0x4d   :  { %257 = vmatpush1.msra.mxu1 %v147_v26  ;;  %186 = vmatpush1.msra.mxu0 %v145_v29  ;;  %v129_v45 = vld [vmem:[#allocation8 + $0xa0] sm:$0xff]  ;;  %v127_v46 = vld [vmem:[#allocation8 + $0x90] sm:$0xff]  ;;  %v126_v47 = vld [vmem:[#allocation8 + $0x88] sm:$0xff] }
  0x4e   :  { %258 = vmatprep.subr.mxu1 %v144_v28  ;;  %187 = vmatprep.subr.mxu0 %v142_v31  ;;  %v124_v48 = vld [vmem:[#allocation8 + $0x78] sm:$0xff]  ;;  %v125_v49 = vld [vmem:[#allocation8 + $0x80] sm:$0xff]  ;;  %v123_v50 = vld [vmem:[#allocation8 + $0x70] sm:$0xff]  ;;  %v463_v28 = vlaneseq }
  0x4f   :  { %259 = vmatpush1.msra.mxu1 %v143_v30  ;;  %188 = vmatpush1.msra.mxu0 %v141_v33  ;;  %v122_v51 = vld [vmem:[#allocation8 + $0x68] sm:$0xff]  ;;  %v120_v52 = vld [vmem:[#allocation8 + $0x58] sm:$0xff]  ;;  %v121_v53 = vld [vmem:[#allocation8 + $0x60] sm:$0xff] }
  0x50   :  { %260 = vmatprep.subr.mxu1 %v140_v32  ;;  %189 = vmatprep.subr.mxu0 %v138_v35  ;;  %v119_v54 = vld [vmem:[#allocation8 + $0x50] sm:$0xff]  ;;  %v118_v55 = vld [vmem:[#allocation8 + $0x48] sm:$0xff]  ;;  %v116_v56 = vld [vmem:[#allocation8 + $0x38] sm:$0xff]  ;;  %v464_v29 = vshrl.u32 %v463_v28, 7 }
  0x51   :  { %261 = vmatpush1.msra.mxu1 %v139_v34  ;;  %190 = vmatpush1.msra.mxu0 %v137_v37  ;;  %v117_v57 = vld [vmem:[#allocation8 + $0x40] sm:$0xff]  ;;  %v115_v58 = vld [vmem:[#allocation8 + $0x30] sm:$0xff]  ;;  %v114_v59 = vld [vmem:[#allocation8 + $0x28] sm:$0xff] }
  0x52   :  { %262 = vmatprep.subr.mxu1 %v136_v36  ;;  %191 = vmatprep.subr.mxu0 %v134_v39  ;;  %v112_v60 = vld [vmem:[#allocation8 + $0x18] sm:$0xff]  ;;  %v113_v61 = vld [vmem:[#allocation8 + $0x20] sm:$0xff]  ;;  %v111_v62 = vld [vmem:[#allocation8 + $0x10] sm:$0xff]  ;;  %v465_v30 = vsub.s32 0, %v464_v29  ;;  %v469_v33 = vsub.s32 1, %v464_v29 }
  0x53   :  { %263 = vmatpush1.msra.mxu1 %v135_v38  ;;  %192 = vmatpush1.msra.mxu0 %v133_v41  ;;  %v110_v63 = vld [vmem:[#allocation8 + $0x8] sm:$0xff]  ;;  %v99_v1 = vld [vmem:[#allocation2] sm:$0xff]  ;;  %v105_v3 = vld [vmem:[#allocation7 + $0x20] sm:$0xff] }
  0x54   :  { %264 = vmatprep.subr.mxu1 %v132_v40  ;;  %193 = vmatprep.subr.mxu0 %v130_v43  ;;  %v106_v2 = vld [vmem:[#allocation7 + $0x28] sm:$0xff]  ;;  %v109_v4 = vld [vmem:[#allocation8] sm:$0xff]  ;;  %v98_v7 = vld [vmem:[%s1034_s0] sm:$0xff] }
  0x55   :  { %265 = vmatpush1.msra.mxu1 %v131_v42  ;;  %194 = vmatpush1.msra.mxu0 %v129_v45  ;;  %v102_v5 = vld [vmem:[#allocation7 + $0x8] sm:$0xff]  ;;  %v101_v6 = vld [vmem:[#allocation7] sm:$0xff]  ;;  %v108_v8 = vld [vmem:[#allocation7 + $0x38] sm:$0xff] }
  0x56   :  { %266 = vmatprep.subr.mxu1 %v128_v44  ;;  %195 = vmatprep.subr.mxu0 %v126_v47  ;;  %v107_v9 = vld [vmem:[#allocation7 + $0x30] sm:$0xff]  ;;  %v104_v10 = vld [vmem:[#allocation7 + $0x18] sm:$0xff]  ;;  %v524_v14 = vld [vmem:[#allocation10 + $0x68] sm:$0xff] }
  0x57   :  { %267 = vmatpush1.msra.mxu1 %v127_v46  ;;  %196 = vmatpush1.msra.mxu0 %v125_v49  ;;  %v103_v11 = vld [vmem:[#allocation7 + $0x10] sm:$0xff]  ;;  %v526_v12 = vld [vmem:[#allocation10 + $0x78] sm:$0xff]  ;;  %v523_v15 = vld [vmem:[#allocation10 + $0x60] sm:$0xff]  ;;  %v477_v46 = vsub.s32 3, %v464_v29 }
  0x58   :  { %268 = vmatprep.subr.mxu1 %v124_v48  ;;  %197 = vmatprep.subr.mxu0 %v122_v51  ;;  %v525_v13 = vld [vmem:[#allocation10 + $0x70] sm:$0xff]  ;;  %v522_v16 = vld [vmem:[#allocation10 + $0x58] sm:$0xff]  ;;  %v520_v18 = vld [vmem:[#allocation10 + $0x48] sm:$0xff]  ;;  %v473_v51 = vsub.s32 2, %v464_v29 }
  0x59   :  { %269 = vmatpush1.msra.mxu1 %v123_v50  ;;  %198 = vmatpush1.msra.mxu0 %v121_v53  ;;  %v521_v17 = vld [vmem:[#allocation10 + $0x50] sm:$0xff]  ;;  %v519_v19 = vld [vmem:[#allocation10 + $0x40] sm:$0xff]  ;;  %v518_v20 = vld [vmem:[#allocation10 + $0x38] sm:$0xff] }
  0x5a   :  { %270 = vmatprep.subr.mxu1 %v120_v52  ;;  %199 = vmatprep.subr.mxu0 %v118_v55  ;;  %v517_v21 = vld [vmem:[#allocation10 + $0x30] sm:$0xff]  ;;  %v516_v22 = vld [vmem:[#allocation10 + $0x28] sm:$0xff]  ;;  %v515_v23 = vld [vmem:[#allocation10 + $0x20] sm:$0xff] }
  0x5b   :  { %271 = vmatpush1.msra.mxu1 %v119_v54  ;;  %200 = vmatpush1.msra.mxu0 %v117_v57  ;;  %v514_v24 = vld [vmem:[#allocation10 + $0x18] sm:$0xff]  ;;  %v513_v25 = vld [vmem:[#allocation10 + $0x10] sm:$0xff]  ;;  %v512_v26 = vld [vmem:[#allocation10 + $0x8] sm:$0xff] }
  0x5c   :  { %272 = vmatprep.subr.mxu1 %v116_v56  ;;  %201 = vmatprep.subr.mxu0 %v114_v59  ;;  %v511_v27 = vld [vmem:[#allocation10] sm:$0xff]  ;;  %v461_v32 = vld [vmem:[%s1039_s5] sm:$0xf]  ;;  %s920_s5 = smov [#allocation12]  }
  0x5d   :  { %273 = vmatpush1.msra.mxu1 %v115_v58  ;;  %202 = vmatpush1.msra.mxu0 %v113_v61  ;;  %v466_v36 = vrot.slane %v461_v32, %v465_v30  ;;  %v470_v39 = vrot.slane %v461_v32, %v469_v33  ;;  %v478_v50 = vrot.slane %v461_v32, %v477_v46  ;;  %s623_s20 = sshll.u32 %s920_s5, 4  ;;  %s624_s20 = int_to_ptr.vmem [resolvable:$true] %s623_s20 }
  0x5e   :  { %274 = vmatprep.subr.mxu1 %v112_v60  ;;  %203 = vmatprep.subr.mxu0 %v110_v63  ;;  %v474_v54 = vrot.slane %v461_v32, %v473_v51  ;;  %v100_v63 = vld [vmem:[#allocation5] sm:$0xff]  ;;  %s839_s21 = scalar_lea.vmem %s624_s20, 128  ;;  %p844_p12 = scmp.lt.s32.totalorder %s624_s20, %s624_s20 }
  0x5f   :  { %275 = vmatpush1.msra.mxu1 %v111_v62  ;;  %204 = vmatpush1.msra.mxu0 %v109_v4  ;;  %p840_p11 = scmp.ne.s32.totalorder %s624_s20, %s839_s21  ;;  %p845_p13 = scmp.lt.s32.totalorder %s839_s21, %s839_s21 }
  0x60   :  { %309 = vmatmul.mubr.f32.vlgmr.msra.gmra.mxu1 %v99_v1  ;;  %347 = vmatprep.subr.mxu1 %v106_v2 }
  0x61   :  { %348 = vmatpush1.msra.mxu1 %v105_v3  ;;  %238 = vmatmul.mubr.f32.vlgmr.msra.gmra.mxu0 %v99_v1  ;;  %p846_p0 = por %p845_p13, %p844_p12 }
  0x62   :  { %349 = vmatprep.subr.mxu1 %v102_v5  ;;  %383 = vmatprep.mubr.f32.mxu1 %v918_v0 }
  0x63   :  { %350 = vmatpush1.msra.mxu1 %v101_v6  ;;  %674 = vmatprep.subr.mxu0 %v918_v0  ;;  %p847_p1 = pnand %p846_p0, %p840_p11 }
  0x64   :  { %651 = vmatmul.mubr.msk.f32.vlgmr.msra.gmra.mxu1 %vm315_vm0, %v98_v7  ;;  %418 = vmatprep.subr.mxu1 %v108_v8 }
  0x65   :  { %419 = vmatpush1.msra.mxu1 %v107_v9  ;;  %454 = vmatprep.mubr.f32.mxu1 %v918_v0 }
  0x66   :  { %420 = vmatprep.subr.mxu1 %v104_v10  ;;  %675 = vmatpush3.msra.mxu0 %v526_v12 }
  0x67   :  { %421 = vmatpush1.msra.mxu1 %v103_v11  ;;  %676 = vmatprep.subr.mxu0 %v918_v0 }
  0x68   :  { %652 = vmatmul.mubr.msk.f32.vlgmr.msra.gmra.mxu1 %vm315_vm0, %v98_v7  ;;  %677 = vmatpush3.msra.mxu0 %v525_v13 }
  0x69   :  { %678 = vmatprep.subr.mxu0 %v918_v0  ;;  %706 = vmatprep.mubr.msk.f32.mxu0 %vm919_vm1, %v918_v0 }
  0x6a   :  { %679 = vmatpush3.msra.mxu0 %v524_v14 }
  0x6b   :  { %680 = vmatprep.subr.mxu0 %v918_v0 }
  0x6c   :  { %681 = vmatpush3.msra.mxu0 %v523_v15 }
  0x6d   :  { %682 = vmatprep.subr.mxu0 %v918_v0 }
  0x6e   :  { %683 = vmatpush3.msra.mxu0 %v522_v16 }
  0x6f   :  { %684 = vmatprep.subr.mxu0 %v918_v0 }
  0x70   :  { %685 = vmatpush3.msra.mxu0 %v521_v17 }
  0x71   :  { %686 = vmatprep.subr.mxu0 %v918_v0 }
  0x72   :  { %687 = vmatpush3.msra.mxu0 %v520_v18 }
  0x73   :  { %688 = vmatprep.subr.mxu0 %v918_v0 }
  0x74   :  { %689 = vmatpush3.msra.mxu0 %v519_v19 }
  0x75   :  { %690 = vmatprep.subr.mxu0 %v918_v0 }
  0x76   :  { %691 = vmatpush3.msra.mxu0 %v518_v20 }
  0x77   :  { %692 = vmatprep.subr.mxu0 %v918_v0 }
  0x78   :  { %693 = vmatpush3.msra.mxu0 %v517_v21 }
  0x79   :  { %694 = vmatprep.subr.mxu0 %v918_v0 }
  0x7a   :  { %695 = vmatpush3.msra.mxu0 %v516_v22 }
  0x7b   :  { %696 = vmatprep.subr.mxu0 %v918_v0 }
  0x7c   :  { %697 = vmatpush3.msra.mxu0 %v515_v23 }
  0x7d   :  { %698 = vmatprep.subr.mxu0 %v918_v0 }
  0x7e   :  { %699 = vmatpush3.msra.mxu0 %v514_v24 }
  0x7f   :  { %700 = vmatprep.subr.mxu0 %v918_v0 }
  0x80   :  { %701 = vmatpush3.msra.mxu0 %v513_v25 }
  0x81   :  { %702 = vmatprep.subr.mxu0 %v918_v0 }
  0x82   :  { %703 = vmatpush3.msra.mxu0 %v512_v26 }
  0x83   :  { %704 = vmatprep.subr.mxu0 %v918_v0 }
  0x84   :  { %705 = vmatpush3.msra.mxu0 %v511_v27 }
 0x120   :  { %v310_v31 = vpop.f32.mrf.mxu1 }
 0x121   :  { %v239_v35 = vpop.f32.mrf.mxu0 }
 0x122   :  { %v312_v34 = vpop.f32.mrf.mxu1 }
 0x123   :  { %v241_v40 = vpop.f32.mrf.mxu0 }
 0x124   :  { %v385_v37 = vpop.f32.mrf.mxu1 }
 0x125   :  { %v386_v38 = vadd.f32 %v385_v37, %v239_v35 }
 0x126   :  { %v387_v41 = vpop.f32.mrf.mxu1 }
 0x127   :  { %v483_v42 = vadd.f32 %v466_v36, %v386_v38  ;;  %v388_v0 = vadd.f32 %v387_v41, %v241_v40 }
 0x128   :  { %v456_v43 = vpop.f32.mrf.mxu1 }
 0x129   :  { %v653_v44 = vmul.f32 -1.442695, %v483_v42  ;;  %v484_v45 = vadd.f32 %v470_v39, %v388_v0  ;;  %v457_v53 = vadd.f32 %v456_v43, %v310_v31 }
 0x12a   :  { %v458_v48 = vpop.f32.mrf.mxu1 }
 0x12b   :  { %723 = vpow2.f32 %v653_v44  ;;  %v654_v47 = vmul.f32 -1.442695, %v484_v45  ;;  %v459_v49 = vadd.f32 %v458_v48, %v312_v34  ;;  %v485_v57 = vadd.f32 %v474_v54, %v457_v53 }
 0x12d   :  { %725 = vpow2.f32 %v654_v47  ;;  %v486_v52 = vadd.f32 %v478_v50, %v459_v49 }
 0x12f   :  { %v655_v55 = vmul.f32 -1.442695, %v486_v52 }
 0x131   :  { %727 = vpow2.f32 %v655_v55 }
 0x138   :  { %v724_v56 = vpop.eup %723 }
 0x139   :  { %v490_v58 = vadd.f32 1.0, %v724_v56 }
 0x13a   :  { %v726_v59 = vpop.eup %725 }
 0x13b   :  { %729 = vrcp.f32 %v490_v58  ;;  %v496_v60 = vadd.f32 1.0, %v726_v59 }
 0x13c   :  { %731 = vtanh.f32 %v485_v57 }
 0x13d   :  { %733 = vrcp.f32 %v496_v60 }
 0x13e   :  { %v728_v61 = vpop.eup %727 }
 0x13f   :  { %v503_v3 = vadd.f32 1.0, %v728_v61 }
 0x141   :  { %735 = vrcp.f32 %v503_v3 }
 0x148   :  { %v730_v62 = vpop.eup %729 }
 0x149   :  { %v732_v1 = vpop.eup %731  ;;  %v506_v4 = vmul.f32 %v730_v62, %v100_v63 }
 0x14a   :  { %v734_v2 = vpop.eup %733 }
 0x14b   :  { %v507_v5 = vmul.f32 %v734_v2, %v732_v1 }
 0x14d   :  { %v508_v6 = vadd.f32 %v507_v5, %v506_v4 }
 0x14e   :  { %v736_v7 = vpop.eup %735 }
 0x14f   :  { %737 = vtanh.f32 %v508_v6  ;;  %606 = vst [vmem:[#allocation14] sm:$0xff] %v508_v6 }
 0x15c   :  { %v738_v8 = vpop.eup %737 }
 0x15d   :  { %v510_v9 = vmul.f32 %v738_v8, %v736_v7 }
 0x15f   :  { %707 = vmatmul.mubr.f32.vlgmr.msra.gmra.mxu0 %v510_v9  ;;  %605 = vst [vmem:[#allocation12] sm:$0xff] %v510_v9 }
 0x160   :  { %850 = shalt.err (!%p847_p1)
}
 0x161   :  { %626 = dma.vmem_to_hbm [thread:$0]  %s624_s20, 128, %s1043_s9, [#allocation13]  }
 0x162   :  { %s921_s24 = smov [#allocation14]  }
 0x163   :  { %s633_s25 = sshll.u32 %s921_s24, 4  ;;  %s634_s25 = int_to_ptr.vmem [resolvable:$true] %s633_s25 }
 0x164   :  { %s859_s26 = scalar_lea.vmem %s634_s25, 128  ;;  %p864_p3 = scmp.lt.s32.totalorder %s634_s25, %s634_s25 }
 0x165   :  { %p860_p2 = scmp.ne.s32.totalorder %s634_s25, %s859_s26  ;;  %p865_p4 = scmp.lt.s32.totalorder %s859_s26, %s859_s26 }
 0x167   :  { %p866_p5 = por %p865_p4, %p864_p3 }
 0x169   :  { %p867_p6 = pnand %p866_p5, %p860_p2 }
 0x16b   :  { %870 = shalt.err (!%p867_p6)
}
 0x16c   :  { %636 = dma.vmem_to_hbm [thread:$0]  %s634_s25, 128, %s1044_s10, [#allocation13]   ;;  %v656_v10 = vld [vmem:[%s1041_s7] ss:$0 sm:$0xff] }
 0x16d   :  { %s922_s30 = smov [#allocation11]  }
 0x16e   :  { %s613_s9 = sshll.u32 %s922_s30, 4  ;;  %s614_s9 = int_to_ptr.vmem [resolvable:$true] %s613_s9 }
 0x16f   :  { %s879_s11 = scalar_lea.vmem %s614_s9, 128  ;;  %p884_p8 = scmp.lt.s32.totalorder %s614_s9, %s614_s9 }
 0x170   :  { %p880_p7 = scmp.ne.s32.totalorder %s614_s9, %s879_s11  ;;  %p885_p9 = scmp.lt.s32.totalorder %s879_s11, %s879_s11 }
 0x172   :  { %p886_p10 = por %p885_p9, %p884_p8 }
 0x174   :  { %p887_p11 = pnand %p886_p10, %p880_p7 }
 0x21f   :  { %v600_v11 = vpop.f32.mrf.mxu0 }
 0x220   :  { %v601_v12 = vadd.f32 %v656_v10, %v600_v11 }
 0x221   :  { %v708_v13 = vpop.f32.mrf.mxu0 }
 0x222   :  { %604 = vst [vmem:[#allocation11] sm:$0xff] %v601_v12 }
 0x223   :  { %890 = shalt.err (!%p887_p11)
}
 0x224   :  { %616 = dma.vmem_to_hbm [thread:$0]  %s614_s9, 128, %s1042_s8, [#allocation4]  }
 0x225   :  { %905 = dma.done.wait [#allocation4], 128  }
 0x226   :  { %906 = vsyncadd [#allocation4], 4294967168 }
 0x227   :  { %907 = dma.done.wait [#allocation13], 256  }
 0x228   :  { %908 = vsyncadd [#allocation13], 4294967040 }
 0x229   :  { %646 = vsyncpa [#allocation3], 1 }
 0x22a   :  { %647 = vsyncpa [#allocation6], 1 }
 0x22b   :  { %648 = vsyncpa [#allocation9], 1 }
 0x22c   :  { %649 = vsyncpa [#allocation4], 1 }
 0x22d   :  { %650 = vsyncpa [#allocation13], 1 }

</bundles_post_ra>
